<compile_context>
chip_gen: v6e
topology: v6e:2x2x1
jax: 0.10.0
libtpu: 0.0.40
codegen_flags: <defaults>
</compile_context>

<pallas_src>
import jax
import jax.numpy as jnp
from jax.experimental import pallas as pl
from jax.experimental.pallas import tpu as pltpu

_LANE = 128
# Widest-first candidates for the lane-dense 2D view of the flat buffer.
_COL_CANDIDATES = (32768, 16384, 8192, 4096, 2048, 1024, 512, 256, 128)
_MAX_DMA_CHUNKS = 8        # concurrent HBM->HBM DMAs (overlap across DMA engines)
_MIN_ROWS_FOR_SPLIT = 64   # prefer a cols choice that leaves >= 64 rows to chunk
_FLAT_CHUNK_ALIGN = 4096   # chunk-start alignment (elements) for the flat 1D path


def _ceil_div(a: int, b: int) -> int:
    return -(-a // b)


def _row_align(dtype) -> int:
    # Sublane packing: 8 rows for 4-byte, 16 for 2-byte, 32 for 1-byte dtypes.
    itemsize = jnp.dtype(dtype).itemsize
    return max(8, 32 // max(itemsize, 1))


def _build_chunks(lead: int, max_chunks: int, align: int):
    """Static (start, size) chunks along the leading dim; starts aligned to `align`."""
    if max_chunks <= 1 or lead <= align:
        return ((0, lead),)
    per = _ceil_div(_ceil_div(lead, max_chunks), align) * align
    chunks, start = [], 0
    while start < lead:
        size = min(per, lead - start)
        chunks.append((start, size))
        start += size
    return tuple(chunks)


def _dma_clone(x: jax.Array, *, chunk_align: int) -> jax.Array:
    """Identity copy via direct HBM->HBM DMAs (no VMEM staging)."""
    shape, dtype = x.shape, x.dtype
    itemsize = jnp.dtype(dtype).itemsize
    chunks = _build_chunks(shape[0], _MAX_DMA_CHUNKS, chunk_align)
    n_chunks = len(chunks)

    def kernel(x_hbm, o_hbm, sem):
        if n_chunks == 1:
            cp = pltpu.make_async_copy(x_hbm, o_hbm, sem.at[0])
            cp.start()
            cp.wait()
        else:
            copies = []
            for k, (start, size) in enumerate(chunks):
                cp = pltpu.make_async_copy(
                    x_hbm.at[pl.ds(start, size)],
                    o_hbm.at[pl.ds(start, size)],
                    sem.at[k],
                )
                cp.start()
                copies.append(cp)
            for cp in copies:
                cp.wait()

    return pl.pallas_call(
        kernel,
        out_shape=jax.ShapeDtypeStruct(shape, dtype),
        in_specs=[pl.BlockSpec(memory_space=pl.ANY)],
        out_specs=pl.BlockSpec(memory_space=pl.ANY),
        scratch_shapes=[pltpu.SemaphoreType.DMA((n_chunks,))],
        cost_estimate=pl.CostEstimate(
            flops=0,
            transcendentals=0,
            bytes_accessed=2 * x.size * itemsize,
        ),
    )(x)


def _pick_cols(n: int) -> int:
    # Widest lane-dense cols that still leaves enough rows to split into chunks.
    for c in _COL_CANDIDATES:
        if n % c == 0 and n // c >= _MIN_ROWS_FOR_SPLIT:
            return c
    for c in _COL_CANDIDATES:
        if n % c == 0:
            return c
    return _LANE


def clone(x: jax.Array) -> jax.Array:
    """Pallas implementation of torch.ops.aten.clone.default (identity copy)."""
    orig_shape = x.shape
    dtype = x.dtype
    n = x.size

    if n == 0:
        return jnp.empty(orig_shape, dtype=dtype)

    if n % _LANE == 0:
        # Lane-dense 2D view of the contiguous buffer; chunk along rows.
        cols = _pick_cols(n)
        rows = n // cols
        out = _dma_clone(x.reshape(rows, cols), chunk_align=_row_align(dtype))
        return out.reshape(orig_shape)

    # Lane-misaligned sizes: copy the flat buffer directly (no pad / slice).
    out = _dma_clone(x.reshape(-1), chunk_align=_FLAT_CHUNK_ALIGN)
    return out.reshape(orig_shape)


if __name__ == "__main__":
    key = jax.random.PRNGKey(0)
    k1, k2, k3, k4 = jax.random.split(key, 4)

    # Primary test: small NCHW-like input (aligned path, single-chunk DMA).
    x = jax.random.normal(k1, (2, 4, 16, 16), dtype=jnp.float32)
    y = clone(x)
    jax.block_until_ready(y)
    assert y.shape == x.shape and y.dtype == x.dtype
    assert bool(jnp.array_equal(y, x))

    # Lane-misaligned shape: flat-buffer DMA path (no pad / slice traffic).
    x2 = jax.random.normal(k2, (3, 5, 7), dtype=jnp.float32)
    y2 = clone(x2)
    jax.block_until_ready(y2)
    assert y2.shape == x2.shape and bool(jnp.array_equal(y2, x2))

    # bf16 dtype (sublane-packing-aware chunk alignment).
    x3 = jax.random.normal(k3, (2, 4, 16, 16), dtype=jnp.bfloat16)
    y3 = clone(x3)
    jax.block_until_ready(y3)
    assert y3.dtype == x3.dtype and bool(jnp.array_equal(y3, x3))

    # Larger tensor exercising the multi-chunk (8 concurrent DMAs) path.
    x4 = jax.random.normal(k4, (16, 256, 128), dtype=jnp.float32)
    y4 = clone(x4)
    jax.block_until_ready(y4)
    assert y4.shape == x4.shape and bool(jnp.array_equal(y4, x4))

    print("KERNEL_OK")
</pallas_src>

<mosaic_0001>
module attributes {stable_mosaic.version = 11 : i64} {
  func.func @kernel(%arg0: memref<1x2048xf32, #tpu.memory_space<any>>, %arg1: memref<1x2048xf32, #tpu.memory_space<any>>, %arg2: memref<1x!tpu.dma_semaphore, #tpu.memory_space<semaphore_mem>>) attributes {dimension_semantics = [], scalar_prefetch = 0 : i64, scratch_operands = 1 : i64, tpu.core_type = #tpu.core_type<tc>} {
    %c0_i32 = arith.constant 0 : i32
    %0 = tpu.memref_slice %arg2[%c0_i32] : memref<1x!tpu.dma_semaphore, #tpu.memory_space<semaphore_mem>> -> memref<1x!tpu.dma_semaphore, #tpu.memory_space<semaphore_mem>>
    %1 = tpu.memref_squeeze %0 : memref<1x!tpu.dma_semaphore, #tpu.memory_space<semaphore_mem>> -> memref<!tpu.dma_semaphore, #tpu.memory_space<semaphore_mem>>
    tpu.enqueue_dma source(%arg0 : memref<1x2048xf32, #tpu.memory_space<any>>) target(%arg1 : memref<1x2048xf32, #tpu.memory_space<any>>) target_semaphore(%1 : memref<!tpu.dma_semaphore, #tpu.memory_space<semaphore_mem>>)
    %c0_i32_0 = arith.constant 0 : i32
    %2 = tpu.memref_slice %arg2[%c0_i32_0] : memref<1x!tpu.dma_semaphore, #tpu.memory_space<semaphore_mem>> -> memref<1x!tpu.dma_semaphore, #tpu.memory_space<semaphore_mem>>
    %3 = tpu.memref_squeeze %2 : memref<1x!tpu.dma_semaphore, #tpu.memory_space<semaphore_mem>> -> memref<!tpu.dma_semaphore, #tpu.memory_space<semaphore_mem>>
    tpu.wait_dma2 semaphore(%3 : memref<!tpu.dma_semaphore, #tpu.memory_space<semaphore_mem>>) src(%arg0 : memref<1x2048xf32, #tpu.memory_space<any>>) dst(%arg1 : memref<1x2048xf32, #tpu.memory_space<any>>)
    return
  }
}

</mosaic_0001>

<bundles_post_ra>
// kernel: tpu_custom_call.1
= control target key start
LH: loop header
LB: loop body
LE: loop exit
PB: predicated region body
PF: predicated region fallthrough
CT: control target
= control target key end

     0   :  { %s28_s6 = smov [#allocation2]   ;;  %s29_s7 = smov 131072   ;;  %s47_s0 = inlined_call_operand.hbm [shape: f32[1,2048], index: 0, kind: input, shape index: {}]   ;;  %s48_s1 = inlined_call_operand.hbm [shape: f32[1,2048], index: 1, kind: output, shape index: {}]  }
   0x1   :  { %s30_s8 = smov 0  }
   0x2   :  { %12 = dma.general %s47_s0, 256, %s48_s1, %s28_s6, %s29_s7, [#allocation4], %s30_s8, 0  }
   0x3   :  { %26 = dma.done.wait [#allocation2], 256 }
   0x4   :  { %27 = vsyncadd [#allocation2], 4294967040 }
   0x5   :  { %16 = vsyncmov [#allocation2] }
   0x8   :  { %s17_s13 = vpop.sfrf %16 }
   0x9   :  { %p22_p0 = scmp.ne.s32.totalorder %s17_s13, 0 }
   0xb   :  { %21 = shalt.err (%p22_p0)  }

</bundles_post_ra>
